<compile_context>
chip_gen: v6e
topology: v6e:2x2x1
jax: 0.10.0
libtpu: 0.0.40
codegen_flags: <defaults>
</compile_context>

<pallas_src>
import numpy as np
import jax
import jax.numpy as jnp
from jax import lax
from jax.experimental import pallas as pl
from jax.experimental.pallas import tpu as pltpu


# ------------------------------ helpers ------------------------------------ #

def _round_up(x, m):
    return ((x + m - 1) // m) * m


def _largest_divisor_leq(n, cap):
    cap = max(1, min(n, cap))
    for d in range(cap, 0, -1):
        if n % d == 0:
            return d
    return 1


# ----------------------------- Pallas kernels ------------------------------ #

def fc_gates_kernel(x_ref, wfc_ref, bfc_ref, wih_ref, bih_ref, gxf_ref, gxb_ref):
    """Fused bert_fc + hoisted input-side LSTM gate projection (lane-dense matmuls)."""
    Tc, Bp, E = x_ref.shape
    G4 = gxf_ref.shape[-1]                              # 4 * Hp (per direction)
    x = x_ref[...].reshape(Tc * Bp, E)
    # nn.Dropout(0.5) is the identity at inference time (eval mode).
    proj = jnp.tanh(jnp.dot(x, wfc_ref[...], preferred_element_type=jnp.float32)
                    + bfc_ref[...])
    gates = jnp.dot(proj, wih_ref[...], preferred_element_type=jnp.float32) + bih_ref[...]
    gxf_ref[...] = gates[:, :G4].reshape(Tc, Bp, G4)
    gxb_ref[...] = gates[:, G4:].reshape(Tc, Bp, G4)


def bilstm_kernel(lens_ref, gxf_ref, gxb_ref, whh_f_ref, whh_b_ref, out_ref):
    """Fused bidirectional LSTM recurrence over one batch tile.

    Iteration s: forward direction handles time s, backward handles time T-1-s.
    h/c live in the fori_loop carry (vregs).  Carrying the *zeroed* state past the
    sequence length is output-equivalent to packed-sequence semantics only because the
    initial h/c are zero.
    """
    T = gxf_ref.shape[0]
    Hp = whh_f_ref.shape[0]
    Bt = lens_ref.shape[0]
    lens = lens_ref[...]                                 # [Bt, 1] int32

    def lstm_cell(pre, c):
        # PyTorch gate order i, f, g, o; each gate sits on a 128-lane boundary.
        i = jax.nn.sigmoid(pre[:, 0:Hp])
        f = jax.nn.sigmoid(pre[:, Hp:2 * Hp])
        g = jnp.tanh(pre[:, 2 * Hp:3 * Hp])
        o = jax.nn.sigmoid(pre[:, 3 * Hp:4 * Hp])
        c_new = f * c + i * g
        h_new = o * jnp.tanh(c_new)
        return h_new, c_new

    zeros = jnp.zeros((Bt, Hp), jnp.float32)

    def step(s, carry):
        h_f, c_f, h_b, c_b = carry
        tb = T - 1 - s
        # Only the recurrent matmul remains inside the serial loop; input-side gates
        # (+ folded biases) were precomputed by fc_gates_kernel.
        pre_f = gxf_ref[s] + jnp.dot(h_f, whh_f_ref[...],
                                     preferred_element_type=jnp.float32)
        pre_b = gxb_ref[tb] + jnp.dot(h_b, whh_b_ref[...],
                                      preferred_element_type=jnp.float32)
        h_f_new, c_f_new = lstm_cell(pre_f, c_f)
        h_b_new, c_b_new = lstm_cell(pre_b, c_b)
        mask_f = s < lens                                # [Bt, 1] bool
        mask_b = tb < lens
        h_f_m = jnp.where(mask_f, h_f_new, 0.0)          # reused for carry AND output
        c_f_m = jnp.where(mask_f, c_f_new, 0.0)
        h_b_m = jnp.where(mask_b, h_b_new, 0.0)
        c_b_m = jnp.where(mask_b, c_b_new, 0.0)
        # fwd -> lanes [0:Hp), bwd -> lanes [Hp:2Hp) of the shared time-major output.
        out_ref[s, :, 0:Hp] = h_f_m
        out_ref[tb, :, Hp:2 * Hp] = h_b_m
        return (h_f_m, c_f_m, h_b_m, c_b_m)

    lax.fori_loop(0, T, step, (zeros, zeros, zeros, zeros), unroll=(T <= 16))


# ------------------------------- wrappers ---------------------------------- #

_VMEM_LIMIT = 32 * 1024 * 1024     # explicit scoped-VMEM budget; fits v5e/v6e/v7x


def fc_input_proj(x_tm, wfc_p, bfc_p, wih_comb, bih_comb):
    T, Bp, E = x_tm.shape
    Eop = wfc_p.shape[1]
    G8 = wih_comb.shape[1]
    G4 = G8 // 2
    Tc = _largest_divisor_leq(T, max(1, 512 // Bp))      # ~512-row tiles where possible
    return pl.pallas_call(
        fc_gates_kernel,
        out_shape=(jax.ShapeDtypeStruct((T, Bp, G4), jnp.float32),
                   jax.ShapeDtypeStruct((T, Bp, G4), jnp.float32)),
        grid=(T // Tc,),
        in_specs=[
            pl.BlockSpec((Tc, Bp, E), lambda i: (i, 0, 0)),
            pl.BlockSpec((E, Eop), lambda i: (0, 0)),
            pl.BlockSpec((1, Eop), lambda i: (0, 0)),
            pl.BlockSpec((Eop, G8), lambda i: (0, 0)),
            pl.BlockSpec((1, G8), lambda i: (0, 0)),
        ],
        out_specs=(pl.BlockSpec((Tc, Bp, G4), lambda i: (i, 0, 0)),
                   pl.BlockSpec((Tc, Bp, G4), lambda i: (i, 0, 0))),
        compiler_params=pltpu.CompilerParams(
            dimension_semantics=("parallel",),
            vmem_limit_bytes=_VMEM_LIMIT),
    )(x_tm, wfc_p, bfc_p, wih_comb, bih_comb)


def bilstm(lens_col, gxf, gxb, whh_f_p, whh_b_p, Bt):
    T, Bp, G4 = gxf.shape
    Hp = whh_f_p.shape[0]
    return pl.pallas_call(
        bilstm_kernel,
        out_shape=jax.ShapeDtypeStruct((T, Bp, 2 * Hp), jnp.float32),
        grid=(Bp // Bt,),
        in_specs=[
            pl.BlockSpec((Bt, 1), lambda b: (b, 0)),
            pl.BlockSpec((T, Bt, G4), lambda b: (0, b, 0)),
            pl.BlockSpec((T, Bt, G4), lambda b: (0, b, 0)),
            pl.BlockSpec((Hp, 4 * Hp), lambda b: (0, 0)),
            pl.BlockSpec((Hp, 4 * Hp), lambda b: (0, 0)),
        ],
        out_specs=pl.BlockSpec((T, Bt, 2 * Hp), lambda b: (0, b, 0)),
        compiler_params=pltpu.CompilerParams(
            dimension_semantics=("parallel",),           # independent batch tiles (v7x 2 TCs)
            vmem_limit_bytes=_VMEM_LIMIT),
    )(lens_col, gxf, gxb, whh_f_p, whh_b_p)


# --------------------------- weight preparation ----------------------------- #

def _pad_gate_matrix(w, in_dim_p, H, Hp):
    """[4H, in_dim] PyTorch gate-stacked weight -> transposed [in_dim_p, 4*Hp], each gate
    starting on a 128-lane boundary.  Zero padding is inert given zero initial state."""
    in_dim = w.shape[1]
    out = jnp.zeros((in_dim_p, 4 * Hp), jnp.float32)
    for g in range(4):
        out = out.at[:in_dim, g * Hp:g * Hp + H].set(
            w[g * H:(g + 1) * H, :].T.astype(jnp.float32))
    return out


def _pad_gate_bias(bih, bhh, H, Hp):
    b = (bih + bhh).astype(jnp.float32)
    out = jnp.zeros((1, 4 * Hp), jnp.float32)
    for g in range(4):
        out = out.at[0, g * Hp:g * Hp + H].set(b[g * H:(g + 1) * H])
    return out


def text_enc_forward(text_hidden, text_lens, params):
    B, T, E = text_hidden.shape
    H = params["hsize1"]
    Hp = _round_up(H, 128)            # lane-aligned gate blocks
    Eo = 2 * H                        # bert_fc output width (== LSTM input size)
    Eop = _round_up(Eo, 128)
    Bt = min(_round_up(B, 8), 64)     # sublane-aligned batch tile
    Bp = _round_up(B, Bt)

    # Batch padding + time-major layout (the transpose touches only the small raw input).
    x_p = jnp.zeros((Bp, T, E), jnp.float32).at[:B].set(text_hidden.astype(jnp.float32))
    x_tm = jnp.transpose(x_p, (1, 0, 2))                                    # [T, Bp, E]
    lens_col = jnp.zeros((Bp, 1), jnp.int32).at[:B, 0].set(text_lens.astype(jnp.int32))

    # bert_fc weights, padded to Eop output lanes (padded cols give tanh(0)=0 -> inert).
    wfc_p = jnp.zeros((E, Eop), jnp.float32).at[:, :Eo].set(
        params["fc_w"].T.astype(jnp.float32))
    bfc_p = jnp.zeros((1, Eop), jnp.float32).at[0, :Eo].set(
        params["fc_b"].astype(jnp.float32))

    # Input-side LSTM weights/biases for both directions, concatenated along lanes.
    wih_comb = jnp.concatenate(
        [_pad_gate_matrix(params["wih_f"], Eop, H, Hp),
         _pad_gate_matrix(params["wih_b"], Eop, H, Hp)], axis=1)            # [Eop, 8Hp]
    bih_comb = jnp.concatenate(
        [_pad_gate_bias(params["bih_f"], params["bhh_f"], H, Hp),
         _pad_gate_bias(params["bih_b"], params["bhh_b"], H, Hp)], axis=1)  # [1, 8Hp]

    whh_f_p = _pad_gate_matrix(params["whh_f"], Hp, H, Hp)                  # [Hp, 4Hp]
    whh_b_p = _pad_gate_matrix(params["whh_b"], Hp, H, Hp)

    # Kernel 1: fused projection + hoisted input-side gates (time-major outputs).
    gxf, gxb = fc_input_proj(x_tm, wfc_p, bfc_p, wih_comb, bih_comb)

    # Kernel 2: fused bidirectional recurrence.
    # Note: for production-scale T, the gx blocks should be chunked over time
    # (pl.ANY + pltpu.make_async_copy) instead of held fully in VMEM per batch tile.
    out_tm = bilstm(lens_col, gxf, gxb, whh_f_p, whh_b_p, Bt)               # [T, Bp, 2Hp]

    out_bt = jnp.transpose(out_tm, (1, 0, 2))[:B]                           # [B, T, 2Hp]
    if Hp == H:
        text_encoded = out_bt
    else:
        text_encoded = jnp.concatenate(
            [out_bt[:, :, 0:H], out_bt[:, :, Hp:Hp + H]], axis=-1)          # [B, T, 2H]
    return text_encoded, text_lens


# -------------------------- params / reference ----------------------------- #

def init_params(key, embed_size, hsize1):
    assert embed_size == 2 * hsize1, "module is only shape-consistent if embed_size == 2*hsize1"
    ks = jax.random.split(key, 10)
    s = 0.1
    H, E = hsize1, embed_size
    return {
        "hsize1": hsize1,
        "fc_w":  s * jax.random.normal(ks[0], (2 * H, E), jnp.float32),
        "fc_b":  s * jax.random.normal(ks[1], (2 * H,), jnp.float32),
        "wih_f": s * jax.random.normal(ks[2], (4 * H, E), jnp.float32),
        "whh_f": s * jax.random.normal(ks[3], (4 * H, H), jnp.float32),
        "bih_f": s * jax.random.normal(ks[4], (4 * H,), jnp.float32),
        "bhh_f": s * jax.random.normal(ks[5], (4 * H,), jnp.float32),
        "wih_b": s * jax.random.normal(ks[6], (4 * H, E), jnp.float32),
        "whh_b": s * jax.random.normal(ks[7], (4 * H, H), jnp.float32),
        "bih_b": s * jax.random.normal(ks[8], (4 * H,), jnp.float32),
        "bhh_b": s * jax.random.normal(ks[9], (4 * H,), jnp.float32),
    }


def ref_forward(text_hidden, text_lens, P):
    """Pure-JAX reference matching PyTorch eval-mode semantics."""
    H = P["hsize1"]
    proj = jnp.tanh(text_hidden @ P["fc_w"].T + P["fc_b"])
    B, T, _ = proj.shape

    def run_dir(wih, whh, bih, bhh, reverse):
        h = jnp.zeros((B, H), jnp.float32)
        c = jnp.zeros((B, H), jnp.float32)
        out = jnp.zeros((B, T, H), jnp.float32)
        times = range(T - 1, -1, -1) if reverse else range(T)
        for t in times:
            x_t = proj[:, t, :]
            gates = x_t @ wih.T + h @ whh.T + bih + bhh
            i = jax.nn.sigmoid(gates[:, :H]); f = jax.nn.sigmoid(gates[:, H:2 * H])
            g = jnp.tanh(gates[:, 2 * H:3 * H]); o = jax.nn.sigmoid(gates[:, 3 * H:])
            c_new = f * c + i * g
            h_new = o * jnp.tanh(c_new)
            m = (t < text_lens).astype(jnp.float32)[:, None]
            h = m * h_new + (1 - m) * h
            c = m * c_new + (1 - m) * c
            out = out.at[:, t, :].set(m * h_new)
        return out

    fwd = run_dir(P["wih_f"], P["whh_f"], P["bih_f"], P["bhh_f"], False)
    bwd = run_dir(P["wih_b"], P["whh_b"], P["bih_b"], P["bhh_b"], True)
    return jnp.concatenate([fwd, bwd], axis=-1)


# --------------------------------- main ------------------------------------ #

if __name__ == "__main__":
    B, T = 4, 8
    hsize1 = 16
    embed_size = 2 * hsize1     # required for the module's shapes to be consistent

    key = jax.random.PRNGKey(0)
    k_x, k_p = jax.random.split(key)
    text_hidden = jax.random.normal(k_x, (B, T, embed_size), jnp.float32)
    text_lens = jnp.array([8, 5, 3, 1], dtype=jnp.int32)

    params = init_params(k_p, embed_size, hsize1)

    text_encoded, out_lens = text_enc_forward(text_hidden, text_lens, params)
    text_encoded = jax.block_until_ready(text_encoded)

    ref = jax.block_until_ready(ref_forward(text_hidden, text_lens, params))
    assert text_encoded.shape == (B, T, 2 * hsize1)
    assert np.allclose(np.asarray(text_encoded), np.asarray(ref), atol=2e-4, rtol=2e-4)
    assert np.array_equal(np.asarray(out_lens), np.asarray(text_lens))

    print("KERNEL_OK")
</pallas_src>

<mosaic_0001>
module attributes {stable_mosaic.version = 11 : i64} {
  func.func @fc_gates_kernel(%arg0: i32, %arg1: memref<8x8x32xf32, #tpu.memory_space<vmem>>, %arg2: memref<32x128xf32, #tpu.memory_space<vmem>>, %arg3: memref<1x128xf32, #tpu.memory_space<vmem>>, %arg4: memref<128x1024xf32, #tpu.memory_space<vmem>>, %arg5: memref<1x1024xf32, #tpu.memory_space<vmem>>, %arg6: memref<8x8x512xf32, #tpu.memory_space<vmem>>, %arg7: memref<8x8x512xf32, #tpu.memory_space<vmem>>) attributes {dimension_semantics = [#tpu.dimension_semantics<parallel>], iteration_bounds = array<i64: 1>, scalar_prefetch = 0 : i64, scratch_operands = 0 : i64, tpu.core_type = #tpu.core_type<tc>, window_params = [{transform_indices = @transform_0, window_bounds = array<i64: 8, 8, 32>}, {pipeline_mode = #tpu.pipeline_mode<synchronous>, transform_indices = @transform_1, window_bounds = array<i64: 32, 128>}, {pipeline_mode = #tpu.pipeline_mode<synchronous>, transform_indices = @transform_2, window_bounds = array<i64: 1, 128>}, {pipeline_mode = #tpu.pipeline_mode<synchronous>, transform_indices = @transform_3, window_bounds = array<i64: 128, 1024>}, {pipeline_mode = #tpu.pipeline_mode<synchronous>, transform_indices = @transform_4, window_bounds = array<i64: 1, 1024>}, {transform_indices = @transform_5, window_bounds = array<i64: 8, 8, 512>}, {transform_indices = @transform_6, window_bounds = array<i64: 8, 8, 512>}]} {
    %c0 = arith.constant 0 : index
    %c0_0 = arith.constant 0 : index
    %c0_1 = arith.constant 0 : index
    %0 = vector.load %arg1[%c0, %c0_0, %c0_1] : memref<8x8x32xf32, #tpu.memory_space<vmem>>, vector<8x8x32xf32>
    %1 = vector.shape_cast %0 : vector<8x8x32xf32> to vector<64x32xf32>
    %c0_2 = arith.constant 0 : index
    %c0_3 = arith.constant 0 : index
    %2 = vector.load %arg2[%c0_2, %c0_3] : memref<32x128xf32, #tpu.memory_space<vmem>>, vector<32x128xf32>
    %cst = arith.constant dense<0.000000e+00> : vector<64x128xf32>
    %3 = tpu.matmul %1, %2, %cst {dimension_numbers = #tpu.dot_dimension_numbers<[1], [0], [0], [1], [0, 0, 1, 1], [], []>} : vector<64x32xf32>, vector<32x128xf32>, vector<64x128xf32> -> vector<64x128xf32>
    %c0_4 = arith.constant 0 : index
    %c0_5 = arith.constant 0 : index
    %4 = vector.load %arg3[%c0_4, %c0_5] : memref<1x128xf32, #tpu.memory_space<vmem>>, vector<1x128xf32>
    %5 = vector.broadcast %4 : vector<1x128xf32> to vector<64x128xf32>
    %6 = arith.addf %3, %5 : vector<64x128xf32>
    %7 = math.tanh %6 : vector<64x128xf32>
    %c0_6 = arith.constant 0 : index
    %c0_7 = arith.constant 0 : index
    %8 = vector.load %arg4[%c0_6, %c0_7] : memref<128x1024xf32, #tpu.memory_space<vmem>>, vector<128x1024xf32>
    %cst_8 = arith.constant dense<0.000000e+00> : vector<64x1024xf32>
    %9 = tpu.matmul %7, %8, %cst_8 {dimension_numbers = #tpu.dot_dimension_numbers<[1], [0], [0], [1], [0, 0, 1, 1], [], []>} : vector<64x128xf32>, vector<128x1024xf32>, vector<64x1024xf32> -> vector<64x1024xf32>
    %c0_9 = arith.constant 0 : index
    %c0_10 = arith.constant 0 : index
    %10 = vector.load %arg5[%c0_9, %c0_10] : memref<1x1024xf32, #tpu.memory_space<vmem>>, vector<1x1024xf32>
    %11 = vector.broadcast %10 : vector<1x1024xf32> to vector<64x1024xf32>
    %12 = arith.addf %9, %11 : vector<64x1024xf32>
    %13 = vector.extract_strided_slice %12 {offsets = [0, 0], sizes = [64, 512], strides = [1, 1]} : vector<64x1024xf32> to vector<64x512xf32>
    %14 = vector.shape_cast %13 : vector<64x512xf32> to vector<8x8x512xf32>
    %c0_11 = arith.constant 0 : index
    %c0_12 = arith.constant 0 : index
    %c0_13 = arith.constant 0 : index
    %15 = vector.load %arg6[%c0_11, %c0_12, %c0_13] : memref<8x8x512xf32, #tpu.memory_space<vmem>>, vector<8x8x512xf32>
    tpu.vector_store %arg6[%c0_11, %c0_12, %c0_13], %14 {strides = array<i32>} : memref<8x8x512xf32, #tpu.memory_space<vmem>>, vector<8x8x512xf32>,
    %16 = vector.extract_strided_slice %12 {offsets = [0, 512], sizes = [64, 512], strides = [1, 1]} : vector<64x1024xf32> to vector<64x512xf32>
    %17 = vector.shape_cast %16 : vector<64x512xf32> to vector<8x8x512xf32>
    %c0_14 = arith.constant 0 : index
    %c0_15 = arith.constant 0 : index
    %c0_16 = arith.constant 0 : index
    %18 = vector.load %arg7[%c0_14, %c0_15, %c0_16] : memref<8x8x512xf32, #tpu.memory_space<vmem>>, vector<8x8x512xf32>
    tpu.vector_store %arg7[%c0_14, %c0_15, %c0_16], %17 {strides = array<i32>} : memref<8x8x512xf32, #tpu.memory_space<vmem>>, vector<8x8x512xf32>,
    return
  }
  func.func @transform_0(%arg0: i32) -> (i32, i32, i32) {
    %c0_i32 = arith.constant 0 : i32
    %c0_i32_0 = arith.constant 0 : i32
    %c0_i32_1 = arith.constant 0 : i32
    return %arg0, %c0_i32, %c0_i32_0 : i32, i32, i32
  }
  func.func @transform_1(%arg0: i32) -> (i32, i32) {
    %c0_i32 = arith.constant 0 : i32
    %c0_i32_0 = arith.constant 0 : i32
    %c0_i32_1 = arith.constant 0 : i32
    return %c0_i32, %c0_i32_0 : i32, i32
  }
  func.func @transform_2(%arg0: i32) -> (i32, i32) {
    %c0_i32 = arith.constant 0 : i32
    %c0_i32_0 = arith.constant 0 : i32
    %c0_i32_1 = arith.constant 0 : i32
    return %c0_i32, %c0_i32_0 : i32, i32
  }
  func.func @transform_3(%arg0: i32) -> (i32, i32) {
    %c0_i32 = arith.constant 0 : i32
    %c0_i32_0 = arith.constant 0 : i32
    %c0_i32_1 = arith.constant 0 : i32
    return %c0_i32, %c0_i32_0 : i32, i32
  }
  func.func @transform_4(%arg0: i32) -> (i32, i32) {
    %c0_i32 = arith.constant 0 : i32
    %c0_i32_0 = arith.constant 0 : i32
    %c0_i32_1 = arith.constant 0 : i32
    return %c0_i32, %c0_i32_0 : i32, i32
  }
  func.func @transform_5(%arg0: i32) -> (i32, i32, i32) {
    %c0_i32 = arith.constant 0 : i32
    %c0_i32_0 = arith.constant 0 : i32
    %c0_i32_1 = arith.constant 0 : i32
    return %arg0, %c0_i32, %c0_i32_0 : i32, i32, i32
  }
  func.func @transform_6(%arg0: i32) -> (i32, i32, i32) {
    %c0_i32 = arith.constant 0 : i32
    %c0_i32_0 = arith.constant 0 : i32
    %c0_i32_1 = arith.constant 0 : i32
    return %arg0, %c0_i32, %c0_i32_0 : i32, i32, i32
  }
}

</mosaic_0001>

<bundles_post_ra>
// kernel: tpu_custom_call.1
= control target key start
LH: loop header
LB: loop body
LE: loop exit
PB: predicated region body
PF: predicated region fallthrough
CT: control target
= control target key end

     0   :  { %12 = vsyncpa [#allocation3], 0  ;;  %s1588_s0 = inlined_call_operand.hbm [shape: f32[8,8,32], index: 0, kind: input, shape index: {}]   ;;  %s1589_s1 = inlined_call_operand.hbm [shape: f32[32,128], index: 1, kind: input, shape index: {}]   ;;  %s1590_s2 = inlined_call_operand.vmem [shape: f32[1,128], index: 2, kind: input, shape index: {}]   ;;  %s1591_s3 = inlined_call_operand.hbm [shape: f32[128,1024], index: 3, kind: input, shape index: {}]   ;;  %s1592_s4 = inlined_call_operand.hbm [shape: f32[1,1024], index: 4, kind: input, shape index: {}]   ;;  %s1593_s5 = inlined_call_operand.hbm [shape: f32[8,8,512], index: 5, kind: output, shape index: {0}]   ;;  %s1594_s6 = inlined_call_operand.hbm [shape: f32[8,8,512], index: 6, kind: output, shape index: {1}]  }
   0x1   :  { %13 = vsyncpa [#allocation6], 0 }
   0x2   :  { %14 = vsyncpa [#allocation9], 0 }
   0x3   :  { %15 = vsyncpa [#allocation4], 0 }
   0x4   :  { %16 = vsyncpa [#allocation12], 0  ;;  %s1187_s21 = smov [#allocation5]   ;;  %s1188_s23 = smov [#allocation2]  }
   0x5   :  { %s34_s22 = sshll.u32 %s1187_s21, 4  ;;  %s22_s24 = sshll.u32 %s1188_s23, 4  ;;  %s35_s22 = int_to_ptr.vmem [resolvable:$true] %s34_s22  ;;  %s23_s24 = int_to_ptr.vmem [resolvable:$true] %s22_s24 }
   0x6   :  { %s1065_s25 = scalar_lea.vmem %s35_s22, 512  ;;  %p1070_p1 = scmp.lt.s32.totalorder %s35_s22, %s35_s22 }
   0x7   :  { %p1066_p0 = scmp.ne.s32.totalorder %s35_s22, %s1065_s25  ;;  %p1071_p2 = scmp.lt.s32.totalorder %s1065_s25, %s1065_s25 }
   0x9   :  { %p1072_p3 = por %p1071_p2, %p1070_p1 }
   0xb   :  { %p1073_p4 = pnand %p1072_p3, %p1066_p0 }
   0xd   :  { %1076 = shalt.err (!%p1073_p4)
}
   0xe   :  { %s1189_s26 = smov 128   ;;  %s1190_s27 = smov 8  }
   0xf   :  { %40 = dma.hbm_to_vmem [thread:$0]  %s1589_s1, 512, %s35_s22, [#allocation6], %s1189_s26, %s1189_s26, %s1190_s27  }
  0x10   :  { %s1085_s30 = scalar_lea.vmem %s23_s24, 1024  ;;  %p1090_p6 = scmp.lt.s32.totalorder %s23_s24, %s23_s24 }
  0x11   :  { %p1086_p5 = scmp.ne.s32.totalorder %s23_s24, %s1085_s30  ;;  %p1091_p7 = scmp.lt.s32.totalorder %s1085_s30, %s1085_s30 }
  0x13   :  { %p1092_p8 = por %p1091_p7, %p1090_p6 }
  0x15   :  { %p1093_p9 = pnand %p1092_p8, %p1086_p5 }
  0x17   :  { %1096 = shalt.err (!%p1093_p9)
}
  0x18   :  { %28 = dma.hbm_to_vmem [thread:$0]  %s1588_s0, 1024, %s23_s24, [#allocation3], %s1189_s26, %s1189_s26, %s1190_s27  }
  0x19   :  { %s1191_s9 = smov [#allocation7]  }
  0x1a   :  { %s48_s10 = sshll.u32 %s1191_s9, 4  ;;  %s49_s10 = int_to_ptr.vmem [resolvable:$true] %s48_s10 }
  0x1b   :  { %s1105_s11 = scalar_lea.vmem %s49_s10, 16384  ;;  %p1110_p11 = scmp.lt.s32.totalorder %s49_s10, %s49_s10 }
  0x1c   :  { %p1106_p10 = scmp.ne.s32.totalorder %s49_s10, %s1105_s11  ;;  %p1111_p12 = scmp.lt.s32.totalorder %s1105_s11, %s1105_s11 }
  0x1e   :  { %p1112_p13 = por %p1111_p12, %p1110_p11 }
  0x20   :  { %p1113_p0 = pnand %p1112_p13, %p1106_p10 }
  0x22   :  { %1116 = shalt.err (!%p1113_p0)
}
  0x23   :  { %s1192_s1 = smov 1024   ;;  %s1193_s12 = smov 64  }
  0x24   :  { %54 = dma.hbm_to_vmem [thread:$0]  %s1591_s3, 16384, %s49_s10, [#allocation6], %s1192_s1, %s1192_s1, %s1193_s12  }
  0x25   :  { %s1194_s15 = smov [#allocation8]  }
  0x26   :  { %s61_s16 = sshll.u32 %s1194_s15, 4  ;;  %s62_s16 = int_to_ptr.vmem [resolvable:$true] %s61_s16 }
  0x27   :  { %s1125_s0 = scalar_lea.vmem %s62_s16, 128  ;;  %p1130_p2 = scmp.lt.s32.totalorder %s62_s16, %s62_s16 }
  0x28   :  { %p1126_p1 = scmp.ne.s32.totalorder %s62_s16, %s1125_s0  ;;  %p1131_p3 = scmp.lt.s32.totalorder %s1125_s0, %s1125_s0 }
  0x2a   :  { %p1132_p4 = por %p1131_p3, %p1130_p2 }
  0x2c   :  { %p1133_p5 = pnand %p1132_p4, %p1126_p1 }
  0x2e   :  { %1136 = shalt.err (!%p1133_p5)
}
  0x2f   :  { %64 = dma.hbm_to_vmem [thread:$0]  %s1592_s4, 128, %s62_s16, [#allocation9]  }
  0x30   :  { %1177 = dma.done.wait [#allocation3], 1024  }
  0x31   :  { %1178 = vsyncadd [#allocation3], 4294966272 }
  0x32   :  { %1179 = dma.done.wait [#allocation6], 16896  }
  0x33   :  { %1180 = vsyncadd [#allocation6], 4294950400 }
  0x34   :  { %1181 = dma.done.wait [#allocation9], 128  }
  0x35   :  { %1182 = vsyncadd [#allocation9], 4294967168  ;;  %vm96_vm0 = vcmask 261120   ;;  %v88_v0 = vld [vmem:[#allocation5 + $0x18] sm:$0xff]  ;;  %v87_v1 = vld [vmem:[#allocation5 + $0x10] sm:$0xff] }
  0x36   :  { %976 = vmatprep.subr.mxu0 %v88_v0  ;;  %v77_v2 = vld [vmem:[#allocation2] sm:$0xff]  ;;  %v86_v3 = vld [vmem:[#allocation5 + $0x8] sm:$0xff]  ;;  %v357_v10 = vld [vmem:[#allocation7 + $0x3d8] sm:$0xff] }
  0x37   :  { %977 = vmatpush3.msra.mxu0 %v88_v0  ;;  %984 = vmatprep.mubr.msk.f32.mxu0 %vm96_vm0, %v77_v2  ;;  %v85_v4 = vld [vmem:[#allocation5] sm:$0xff]  ;;  %v355_v5 = vld [vmem:[#allocation7 + $0x3c8] sm:$0xff]  ;;  %v79_v11 = vld [vmem:[#allocation2 + $0x10] sm:$0xff] }
  0x38   :  { %978 = vmatprep.subr.mxu0 %v87_v1  ;;  %v354_v6 = vld [vmem:[#allocation7 + $0x3c0] sm:$0xff]  ;;  %404 = vmatprep.subr.mxu1 %v355_v5  ;;  %v347_v7 = vld [vmem:[#allocation7 + $0x388] sm:$0xff]  ;;  %v356_v12 = vld [vmem:[#allocation7 + $0x3d0] sm:$0xff] }
  0x39   :  { %979 = vmatpush3.msra.mxu0 %v87_v1  ;;  %v346_v8 = vld [vmem:[#allocation7 + $0x380] sm:$0xff]  ;;  %v78_v9 = vld [vmem:[#allocation2 + $0x8] sm:$0xff]  ;;  %405 = vmatpush1.msra.mxu1 %v354_v6  ;;  %v349_v13 = vld [vmem:[#allocation7 + $0x398] sm:$0xff] }
  0x3a   :  { %980 = vmatprep.subr.mxu0 %v86_v3  ;;  %406 = vmatprep.subr.mxu1 %v347_v7  ;;  %v339_v14 = vld [vmem:[#allocation7 + $0x348] sm:$0xff]  ;;  %v348_v15 = vld [vmem:[#allocation7 + $0x390] sm:$0xff]  ;;  %v338_v16 = vld [vmem:[#allocation7 + $0x340] sm:$0xff] }
  0x3b   :  { %981 = vmatpush3.msra.mxu0 %v86_v3  ;;  %407 = vmatpush1.msra.mxu1 %v346_v8  ;;  %v80_v17 = vld [vmem:[#allocation2 + $0x18] sm:$0xff]  ;;  %v81_v19 = vld [vmem:[#allocation2 + $0x20] sm:$0xff]  ;;  %v331_v20 = vld [vmem:[#allocation7 + $0x308] sm:$0xff] }
  0x3c   :  { %982 = vmatprep.subr.mxu0 %v85_v4  ;;  %v341_v18 = vld [vmem:[#allocation7 + $0x358] sm:$0xff]  ;;  %408 = vmatprep.subr.mxu1 %v339_v14  ;;  %v340_v21 = vld [vmem:[#allocation7 + $0x350] sm:$0xff]  ;;  %v330_v22 = vld [vmem:[#allocation7 + $0x300] sm:$0xff] }
  0x3d   :  { %983 = vmatpush3.msra.mxu0 %v85_v4  ;;  %409 = vmatpush1.msra.mxu1 %v338_v16  ;;  %v333_v23 = vld [vmem:[#allocation7 + $0x318] sm:$0xff]  ;;  %v323_v24 = vld [vmem:[#allocation7 + $0x2c8] sm:$0xff]  ;;  %v322_v26 = vld [vmem:[#allocation7 + $0x2c0] sm:$0xff] }
  0x3e   :  { %985 = vmatmul.mubr.msk.f32.vlgmr.msra.gmra.mxu0 %vm96_vm0, %v78_v9  ;;  %517 = vmatprep.subr.mxu0 %v357_v10  ;;  %v82_v25 = vld [vmem:[#allocation2 + $0x28] sm:$0xff]  ;;  %v83_v27 = vld [vmem:[#allocation2 + $0x30] sm:$0xff]  ;;  %v325_v29 = vld [vmem:[#allocation7 + $0x2d8] sm:$0xff] }
  0x3f   :  { %987 = vmatprep.mubr.msk.f32.mxu0 %vm96_vm0, %v79_v11  ;;  %518 = vmatpush1.msra.mxu0 %v356_v12  ;;  %v332_v28 = vld [vmem:[#allocation7 + $0x310] sm:$0xff]  ;;  %v315_v30 = vld [vmem:[#allocation7 + $0x288] sm:$0xff]  ;;  %v314_v32 = vld [vmem:[#allocation7 + $0x280] sm:$0xff] }
  0x40   :  { %519 = vmatprep.subr.mxu0 %v349_v13  ;;  %410 = vmatprep.subr.mxu1 %v331_v20  ;;  %v324_v31 = vld [vmem:[#allocation7 + $0x2d0] sm:$0xff]  ;;  %v84_v33 = vld [vmem:[#allocation2 + $0x38] sm:$0xff]  ;;  %v307_v35 = vld [vmem:[#allocation7 + $0x248] sm:$0xff]  ;;  %v1195_v13 = vmov 0.0  }
  0x41   :  { %520 = vmatpush1.msra.mxu0 %v348_v15  ;;  %411 = vmatpush1.msra.mxu1 %v330_v22  ;;  %v317_v34 = vld [vmem:[#allocation7 + $0x298] sm:$0xff]  ;;  %v316_v36 = vld [vmem:[#allocation7 + $0x290] sm:$0xff]  ;;  %v306_v37 = vld [vmem:[#allocation7 + $0x240] sm:$0xff] }
  0x42   :  { %988 = vmatmul.mubr.msk.f32.gmra.mxu0 %vm96_vm0, %v80_v17  ;;  %521 = vmatprep.subr.mxu0 %v341_v18  ;;  %v309_v38 = vld [vmem:[#allocation7 + $0x258] sm:$0xff]  ;;  %v308_v39 = vld [vmem:[#allocation7 + $0x250] sm:$0xff]  ;;  %v299_v40 = vld [vmem:[#allocation7 + $0x208] sm:$0xff] }
  0x43   :  { %990 = vmatprep.mubr.msk.f32.mxu0 %vm96_vm0, %v81_v19  ;;  %522 = vmatpush1.msra.mxu0 %v340_v21  ;;  %v301_v41 = vld [vmem:[#allocation7 + $0x218] sm:$0xff]  ;;  %v298_v42 = vld [vmem:[#allocation7 + $0x200] sm:$0xff]  ;;  %v300_v43 = vld [vmem:[#allocation7 + $0x210] sm:$0xff] }
  0x44   :  { %523 = vmatprep.subr.mxu0 %v333_v23  ;;  %412 = vmatprep.subr.mxu1 %v323_v24  ;;  %v291_v44 = vld [vmem:[#allocation7 + $0x1c8] sm:$0xff]  ;;  %v293_v45 = vld [vmem:[#allocation7 + $0x1d8] sm:$0xff]  ;;  %v290_v46 = vld [vmem:[#allocation7 + $0x1c0] sm:$0xff] }
  0x45   :  { %413 = vmatpush1.msra.mxu1 %v322_v26  ;;  %524 = vmatpush1.msra.mxu0 %v332_v28  ;;  %v292_v47 = vld [vmem:[#allocation7 + $0x1d0] sm:$0xff]  ;;  %v283_v48 = vld [vmem:[#allocation7 + $0x188] sm:$0xff]  ;;  %v285_v49 = vld [vmem:[#allocation7 + $0x198] sm:$0xff] }
  0x46   :  { %991 = vmatmul.mubr.msk.f32.gmra.mxu0 %vm96_vm0, %v82_v25  ;;  %525 = vmatprep.subr.mxu0 %v325_v29  ;;  %v282_v50 = vld [vmem:[#allocation7 + $0x180] sm:$0xff]  ;;  %v284_v51 = vld [vmem:[#allocation7 + $0x190] sm:$0xff]  ;;  %v275_v52 = vld [vmem:[#allocation7 + $0x148] sm:$0xff] }
  0x47   :  { %993 = vmatprep.mubr.msk.f32.mxu0 %vm96_vm0, %v83_v27  ;;  %414 = vmatprep.subr.mxu1 %v315_v30  ;;  %v277_v53 = vld [vmem:[#allocation7 + $0x158] sm:$0xff]  ;;  %v274_v54 = vld [vmem:[#allocation7 + $0x140] sm:$0xff]  ;;  %v276_v55 = vld [vmem:[#allocation7 + $0x150] sm:$0xff] }
  0x48   :  { %526 = vmatpush1.msra.mxu0 %v324_v31  ;;  %415 = vmatpush1.msra.mxu1 %v314_v32  ;;  %v267_v56 = vld [vmem:[#allocation7 + $0x108] sm:$0xff]  ;;  %v269_v57 = vld [vmem:[#allocation7 + $0x118] sm:$0xff]  ;;  %v266_v58 = vld [vmem:[#allocation7 + $0x100] sm:$0xff] }
  0x49   :  { %527 = vmatprep.subr.mxu0 %v317_v34  ;;  %416 = vmatprep.subr.mxu1 %v307_v35  ;;  %v259_v59 = vld [vmem:[#allocation7 + $0xc8] sm:$0xff]  ;;  %v268_v60 = vld [vmem:[#allocation7 + $0x110] sm:$0xff]  ;;  %v258_v61 = vld [vmem:[#allocation7 + $0xc0] sm:$0xff] }
  0x4a   :  { %994 = vmatmul.mubr.msk.f32.gmra.mxu0 %vm96_vm0, %v84_v33  ;;  %417 = vmatpush1.msra.mxu1 %v306_v37  ;;  %v261_v62 = vld [vmem:[#allocation7 + $0xd8] sm:$0xff]  ;;  %v251_v63 = vld [vmem:[#allocation7 + $0x88] sm:$0xff]  ;;  %v260_v0 = vld [vmem:[#allocation7 + $0xd0] sm:$0xff] }
  0x4b   :  { %528 = vmatpush1.msra.mxu0 %v316_v36  ;;  %418 = vmatprep.subr.mxu1 %v299_v40  ;;  %v250_v1 = vld [vmem:[#allocation7 + $0x80] sm:$0xff]  ;;  %v253_v2 = vld [vmem:[#allocation7 + $0x98] sm:$0xff]  ;;  %v243_v3 = vld [vmem:[#allocation7 + $0x48] sm:$0xff] }
  0x4c   :  { %529 = vmatprep.subr.mxu0 %v309_v38  ;;  %419 = vmatpush1.msra.mxu1 %v298_v42  ;;  %v252_v4 = vld [vmem:[#allocation7 + $0x90] sm:$0xff]  ;;  %v242_v5 = vld [vmem:[#allocation7 + $0x40] sm:$0xff]  ;;  %v245_v6 = vld [vmem:[#allocation7 + $0x58] sm:$0xff] }
  0x4d   :  { %530 = vmatpush1.msra.mxu0 %v308_v39  ;;  %420 = vmatprep.subr.mxu1 %v291_v44  ;;  %v244_v7 = vld [vmem:[#allocation7 + $0x50] sm:$0xff]  ;;  %v235_v8 = vld [vmem:[#allocation7 + $0x8] sm:$0xff]  ;;  %v237_v9 = vld [vmem:[#allocation7 + $0x18] sm:$0xff] }
  0x4e   :  { %531 = vmatprep.subr.mxu0 %v301_v41  ;;  %421 = vmatpush1.msra.mxu1 %v290_v46  ;;  %v234_v10 = vld [vmem:[#allocation7] sm:$0xff]  ;;  %v236_v11 = vld [vmem:[#allocation7 + $0x10] sm:$0xff]  ;;  %v359_v12 = vld [vmem:[#allocation7 + $0x3e8] sm:$0xff] }
  0x4f   :  { %532 = vmatpush1.msra.mxu0 %v300_v43  ;;  %422 = vmatprep.subr.mxu1 %v283_v48  ;;  %v1256_v14 = vld [vmem:[#allocation7 + $0x3f8] sm:$0xff]  ;;  %v1263_v16 = vld [vmem:[%s1590_s2] ss:$0 sm:$0xff]  ;;  %v1268_v25 = vld [vmem:[#allocation7 + $0x3f0] sm:$0xff]  ;;  %s1196_s2 = smov [#allocation10]  }
  0x50   :  { %533 = vmatprep.subr.mxu0 %v293_v45  ;;  %423 = vmatpush1.msra.mxu1 %v282_v50  ;;  %v358_v24 = vld [vmem:[#allocation7 + $0x3e0] sm:$0xff]  ;;  %v351_v28 = vld [vmem:[#allocation7 + $0x3a8] sm:$0xff]  ;;  %v1273_v29 = vld [vmem:[#allocation7 + $0x3b8] sm:$0xff]  ;;  %s925_s19 = sshll.u32 %s1196_s2, 4  ;;  %s926_s19 = int_to_ptr.vmem [resolvable:$true] %s925_s19 }
  0x51   :  { %534 = vmatpush1.msra.mxu0 %v292_v47  ;;  %424 = vmatprep.subr.mxu1 %v275_v52  ;;  %v350_v30 = vld [vmem:[#allocation7 + $0x3a0] sm:$0xff]  ;;  %v343_v31 = vld [vmem:[#allocation7 + $0x368] sm:$0xff]  ;;  %v1279_v33 = vld [vmem:[#allocation7 + $0x3b0] sm:$0xff]  ;;  %s1137_s20 = scalar_lea.vmem %s926_s19, 4096  ;;  %p1142_p7 = scmp.lt.s32.totalorder %s926_s19, %s926_s19 }
  0x52   :  { %535 = vmatprep.subr.mxu0 %v285_v49  ;;  %425 = vmatpush1.msra.mxu1 %v274_v54  ;;  %v342_v34 = vld [vmem:[#allocation7 + $0x360] sm:$0xff]  ;;  %v1285_v36 = vld [vmem:[#allocation7 + $0x378] sm:$0xff]  ;;  %v335_v37 = vld [vmem:[#allocation7 + $0x328] sm:$0xff]  ;;  %p1138_p6 = scmp.ne.s32.totalorder %s926_s19, %s1137_s20  ;;  %p1143_p8 = scmp.lt.s32.totalorder %s1137_s20, %s1137_s20 }
  0x53   :  { %536 = vmatpush1.msra.mxu0 %v284_v51  ;;  %426 = vmatprep.subr.mxu1 %v267_v56  ;;  %v1290_v39 = vld [vmem:[#allocation7 + $0x370] sm:$0xff]  ;;  %v334_v40 = vld [vmem:[#allocation7 + $0x320] sm:$0xff]  ;;  %v1293_v41 = vld [vmem:[#allocation7 + $0x338] sm:$0xff] }
  0x54   :  { %537 = vmatprep.subr.mxu0 %v277_v53  ;;  %427 = vmatpush1.msra.mxu1 %v266_v58  ;;  %v327_v42 = vld [vmem:[#allocation7 + $0x2e8] sm:$0xff]  ;;  %v1297_v43 = vld [vmem:[#allocation7 + $0x330] sm:$0xff]  ;;  %v326_v44 = vld [vmem:[#allocation7 + $0x2e0] sm:$0xff]  ;;  %p1144_p9 = por %p1143_p8, %p1142_p7 }
  0x55   :  { %538 = vmatpush1.msra.mxu0 %v276_v55  ;;  %428 = vmatprep.subr.mxu1 %v259_v59  ;;  %v1304_v47 = vld [vmem:[#allocation7 + $0x2f8] sm:$0xff]  ;;  %v319_v48 = vld [vmem:[#allocation7 + $0x2a8] sm:$0xff]  ;;  %v1309_v50 = vld [vmem:[#allocation7 + $0x2f0] sm:$0xff] }
  0x56   :  { %539 = vmatprep.subr.mxu0 %v269_v57  ;;  %429 = vmatpush1.msra.mxu1 %v258_v61  ;;  %v318_v51 = vld [vmem:[#allocation7 + $0x2a0] sm:$0xff]  ;;  %v1312_v52 = vld [vmem:[#allocation7 + $0x2b8] sm:$0xff]  ;;  %v311_v53 = vld [vmem:[#allocation7 + $0x268] sm:$0xff]  ;;  %p1145_p10 = pnand %p1144_p9, %p1138_p6 }
  0x57   :  { %540 = vmatpush1.msra.mxu0 %v268_v60  ;;  %430 = vmatprep.subr.mxu1 %v251_v63  ;;  %v1316_v55 = vld [vmem:[#allocation7 + $0x2b0] sm:$0xff]  ;;  %v310_v56 = vld [vmem:[#allocation7 + $0x260] sm:$0xff]  ;;  %v1323_v58 = vld [vmem:[#allocation7 + $0x278] sm:$0xff] }
  0x58   :  { %541 = vmatprep.subr.mxu0 %v261_v62  ;;  %431 = vmatpush1.msra.mxu1 %v250_v1  ;;  %v303_v59 = vld [vmem:[#allocation7 + $0x228] sm:$0xff]  ;;  %v1328_v61 = vld [vmem:[#allocation7 + $0x270] sm:$0xff]  ;;  %v302_v62 = vld [vmem:[#allocation7 + $0x220] sm:$0xff] }
  0x59   :  { %542 = vmatpush1.msra.mxu0 %v260_v0  ;;  %432 = vmatprep.subr.mxu1 %v243_v3  ;;  %v1331_v63 = vld [vmem:[#allocation7 + $0x238] sm:$0xff]  ;;  %v295_v0 = vld [vmem:[#allocation7 + $0x1e8] sm:$0xff]  ;;  %v1335_v1 = vld [vmem:[#allocation7 + $0x230] sm:$0xff] }
  0x5a   :  { %543 = vmatprep.subr.mxu0 %v253_v2  ;;  %433 = vmatpush1.msra.mxu1 %v242_v5  ;;  %v294_v2 = vld [vmem:[#allocation7 + $0x1e0] sm:$0xff]  ;;  %v287_v5 = vld [vmem:[#allocation7 + $0x1a8] sm:$0xff] }
  0x5b   :  { %544 = vmatpush1.msra.mxu0 %v252_v4  ;;  %434 = vmatprep.subr.mxu1 %v235_v8  ;;  %v1342_v4 = vld [vmem:[#allocation7 + $0x1f8] sm:$0xff]  ;;  %v286_v8 = vld [vmem:[#allocation7 + $0x1a0] sm:$0xff] }
  0x5c   :  { %545 = vmatprep.subr.mxu0 %v245_v6  ;;  %435 = vmatpush1.msra.mxu1 %v234_v10  ;;  %v279_v10 = vld [vmem:[#allocation7 + $0x168] sm:$0xff] }
  0x5d   :  { %546 = vmatpush1.msra.mxu0 %v244_v7  ;;  %468 = vmatprep.mubr.f32.mxu1 %v1195_v13  ;;  %v1347_v7 = vld [vmem:[#allocation7 + $0x1f0] sm:$0xff] }
  0x5e   :  { %547 = vmatprep.subr.mxu0 %v237_v9  ;;  %581 = vmatprep.mubr.f32.mxu0 %v1195_v13  ;;  %v1350_v9 = vld [vmem:[#allocation7 + $0x1b8] sm:$0xff] }
  0x5f   :  { %548 = vmatpush1.msra.mxu0 %v236_v11  ;;  %630 = vmatprep.subr.mxu1 %v359_v12  ;;  %v1354_v11 = vld [vmem:[#allocation7 + $0x1b0] sm:$0xff]  ;;  %v278_v12 = vld [vmem:[#allocation7 + $0x160] sm:$0xff] }
  0x60   :  { %743 = vmatprep.subr.mxu0 %v1256_v14 }
  0xfe   :  { %v986_v15 = vpop.f32.mrf.mxu0 }
  0xff   :  { %v193_v20 = vadd.f32 %v986_v15, %v1263_v16 }
 0x100   :  { %v187_v17 = vpop.f32.mrf.mxu0 }
 0x101   :  { %v188_v18 = vadd.f32 %v1263_v16, %v187_v17  ;;  %v271_v17 = vld [vmem:[#allocation7 + $0x128] sm:$0xff] }
 0x102   :  { %v989_v19 = vpop.f32.mrf.mxu0 }
 0x103   :  { %1041 = vtanh.f32 %v188_v18  ;;  %v203_v27 = vadd.f32 %v989_v19, %v1263_v16  ;;  %v1365_v18 = vld [vmem:[#allocation7 + $0x170] sm:$0xff]  ;;  %v270_v19 = vld [vmem:[#allocation7 + $0x120] sm:$0xff] }
 0x104   :  { %v197_v21 = vpop.f32.mrf.mxu0  ;;  %1043 = vtanh.f32 %v193_v20  ;;  %v1368_v20 = vld [vmem:[#allocation7 + $0x138] sm:$0xff] }
 0x105   :  { %v198_v22 = vadd.f32 %v1263_v16, %v197_v21  ;;  %v263_v21 = vld [vmem:[#allocation7 + $0xe8] sm:$0xff] }
 0x106   :  { %v992_v23 = vpop.f32.mrf.mxu0 }
 0x107   :  { %1045 = vtanh.f32 %v198_v22  ;;  %v213_v49 = vadd.f32 %v992_v23, %v1263_v16  ;;  %v1372_v22 = vld [vmem:[#allocation7 + $0x130] sm:$0xff]  ;;  %v262_v23 = vld [vmem:[#allocation7 + $0xe0] sm:$0xff] }
 0x108   :  { %v207_v32 = vpop.f32.mrf.mxu0  ;;  %1047 = vtanh.f32 %v203_v27  ;;  %v1379_v27 = vld [vmem:[#allocation7 + $0xf8] sm:$0xff] }
 0x109   :  { %v208_v38 = vadd.f32 %v1263_v16, %v207_v32  ;;  %v1386_v32 = vld [vmem:[#allocation7 + $0xb8] sm:$0xff] }
 0x10a   :  { %v995_v46 = vpop.f32.mrf.mxu0 }
 0x10b   :  { %1049 = vtanh.f32 %v208_v38  ;;  %v223_v6 = vadd.f32 %v995_v46, %v1263_v16  ;;  %v246_v38 = vld [vmem:[#allocation7 + $0x60] sm:$0xff]  ;;  %v1401_v46 = vld [vmem:[#allocation7 + $0x70] sm:$0xff] }
 0x10c   :  { %v217_v54 = vpop.f32.mrf.mxu0  ;;  %1051 = vtanh.f32 %v213_v49  ;;  %v1404_v49 = vld [vmem:[#allocation7 + $0x38] sm:$0xff] }
 0x10d   :  { %v218_v60 = vadd.f32 %v1263_v16, %v217_v54  ;;  %v1361_v16 = vld [vmem:[#allocation7 + $0x178] sm:$0xff] }
 0x10f   :  { %1053 = vtanh.f32 %v218_v60 }
 0x110   :  { %v1270_v26 = vpop.eup %1041  ;;  %1055 = vtanh.f32 %v223_v6 }
 0x111   :  { %469 = vmatmul.mubr.f32.vlgmr.msra.gmra.mxu1 %v1270_v26  ;;  %582 = vmatmul.mubr.f32.vlgmr.msra.gmra.mxu0 %v1270_v26  ;;  %v1282_v35 = vpop.eup %1043 }
 0x112   :  { %631 = vmatpush1.msra.mxu1 %v358_v24  ;;  %744 = vmatpush1.msra.mxu0 %v1268_v25 }
 0x113   :  { %632 = vmatprep.subr.mxu1 %v351_v28  ;;  %745 = vmatprep.subr.mxu0 %v1273_v29  ;;  %v255_v28 = vld [vmem:[#allocation7 + $0xa8] sm:$0xff] }
 0x114   :  { %633 = vmatpush1.msra.mxu1 %v350_v30  ;;  %474 = vmatprep.mubr.f32.mxu1 %v1195_v13  ;;  %v1301_v45 = vpop.eup %1045  ;;  %v1383_v30 = vld [vmem:[#allocation7 + $0xf0] sm:$0xff] }
 0x115   :  { %587 = vmatprep.mubr.f32.mxu0 %v1195_v13  ;;  %634 = vmatprep.subr.mxu1 %v343_v31  ;;  %v1320_v57 = vpop.eup %1047  ;;  %v254_v31 = vld [vmem:[#allocation7 + $0xa0] sm:$0xff] }
 0x116   :  { %746 = vmatpush1.msra.mxu0 %v1279_v33  ;;  %475 = vmatmul.mubr.f32.gmra.mxu1 %v1282_v35 }
 0x117   :  { %588 = vmatmul.mubr.f32.gmra.mxu0 %v1282_v35  ;;  %635 = vmatpush1.msra.mxu1 %v342_v34  ;;  %v247_v34 = vld [vmem:[#allocation7 + $0x68] sm:$0xff] }
 0x118   :  { %747 = vmatprep.subr.mxu0 %v1285_v36  ;;  %636 = vmatprep.subr.mxu1 %v335_v37  ;;  %v1339_v3 = vpop.eup %1049  ;;  %v1390_v37 = vld [vmem:[#allocation7 + $0xb0] sm:$0xff] }
 0x119   :  { %748 = vmatpush1.msra.mxu0 %v1290_v39  ;;  %637 = vmatpush1.msra.mxu1 %v334_v40  ;;  %v1358_v15 = vpop.eup %1051 }
 0x11a   :  { %749 = vmatprep.subr.mxu0 %v1293_v41  ;;  %480 = vmatprep.mubr.f32.mxu1 %v1195_v13 }
 0x11b   :  { %593 = vmatprep.mubr.f32.mxu0 %v1195_v13  ;;  %638 = vmatprep.subr.mxu1 %v327_v42  ;;  %v1397_v42 = vld [vmem:[#allocation7 + $0x78] sm:$0xff] }
 0x11c   :  { %750 = vmatpush1.msra.mxu0 %v1297_v43  ;;  %481 = vmatmul.mubr.f32.gmra.mxu1 %v1301_v45  ;;  %v1376_v24 = vpop.eup %1053 }
 0x11d   :  { %594 = vmatmul.mubr.f32.gmra.mxu0 %v1301_v45  ;;  %639 = vmatpush1.msra.mxu1 %v326_v44  ;;  %v1394_v40 = vpop.eup %1055  ;;  %v239_v44 = vld [vmem:[#allocation7 + $0x28] sm:$0xff] }
 0x11e   :  { %751 = vmatprep.subr.mxu0 %v1304_v47  ;;  %640 = vmatprep.subr.mxu1 %v319_v48  ;;  %v238_v48 = vld [vmem:[#allocation7 + $0x20] sm:$0xff] }
 0x11f   :  { %752 = vmatpush1.msra.mxu0 %v1309_v50  ;;  %641 = vmatpush1.msra.mxu1 %v318_v51  ;;  %v1407_v51 = vld [vmem:[#allocation7 + $0x30] sm:$0xff] }
 0x120   :  { %753 = vmatprep.subr.mxu0 %v1312_v52  ;;  %486 = vmatprep.mubr.f32.mxu1 %v1195_v13 }
 0x121   :  { %599 = vmatprep.mubr.f32.mxu0 %v1195_v13  ;;  %642 = vmatprep.subr.mxu1 %v311_v53 }
 0x122   :  { %754 = vmatpush1.msra.mxu0 %v1316_v55  ;;  %487 = vmatmul.mubr.f32.gmra.mxu1 %v1320_v57 }
 0x123   :  { %600 = vmatmul.mubr.f32.gmra.mxu0 %v1320_v57  ;;  %643 = vmatpush1.msra.mxu1 %v310_v56 }
 0x124   :  { %755 = vmatprep.subr.mxu0 %v1323_v58  ;;  %644 = vmatprep.subr.mxu1 %v303_v59 }
 0x125   :  { %756 = vmatpush1.msra.mxu0 %v1328_v61  ;;  %645 = vmatpush1.msra.mxu1 %v302_v62 }
 0x126   :  { %757 = vmatprep.subr.mxu0 %v1331_v63  ;;  %492 = vmatprep.mubr.f32.mxu1 %v1195_v13 }
 0x127   :  { %605 = vmatprep.mubr.f32.mxu0 %v1195_v13  ;;  %646 = vmatprep.subr.mxu1 %v295_v0 }
 0x128   :  { %758 = vmatpush1.msra.mxu0 %v1335_v1  ;;  %493 = vmatmul.mubr.f32.gmra.mxu1 %v1339_v3 }
 0x129   :  { %606 = vmatmul.mubr.f32.gmra.mxu0 %v1339_v3  ;;  %647 = vmatpush1.msra.mxu1 %v294_v2 }
 0x12a   :  { %759 = vmatprep.subr.mxu0 %v1342_v4  ;;  %648 = vmatprep.subr.mxu1 %v287_v5 }
 0x12b   :  { %760 = vmatpush1.msra.mxu0 %v1347_v7  ;;  %649 = vmatpush1.msra.mxu1 %v286_v8 }
 0x12c   :  { %761 = vmatprep.subr.mxu0 %v1350_v9  ;;  %498 = vmatprep.mubr.f32.mxu1 %v1195_v13 }
 0x12d   :  { %611 = vmatprep.mubr.f32.mxu0 %v1195_v13  ;;  %650 = vmatprep.subr.mxu1 %v279_v10 }
 0x12e   :  { %762 = vmatpush1.msra.mxu0 %v1354_v11  ;;  %499 = vmatmul.mubr.f32.gmra.mxu1 %v1358_v15 }
 0x12f   :  { %612 = vmatmul.mubr.f32.gmra.mxu0 %v1358_v15  ;;  %651 = vmatpush1.msra.mxu1 %v278_v12 }
 0x130   :  { %763 = vmatprep.subr.mxu0 %v1361_v16  ;;  %652 = vmatprep.subr.mxu1 %v271_v17 }
 0x131   :  { %764 = vmatpush1.msra.mxu0 %v1365_v18  ;;  %653 = vmatpush1.msra.mxu1 %v270_v19 }
 0x132   :  { %765 = vmatprep.subr.mxu0 %v1368_v20  ;;  %504 = vmatprep.mubr.f32.mxu1 %v1195_v13 }
 0x133   :  { %617 = vmatprep.mubr.f32.mxu0 %v1195_v13  ;;  %654 = vmatprep.subr.mxu1 %v263_v21 }
 0x134   :  { %766 = vmatpush1.msra.mxu0 %v1372_v22  ;;  %505 = vmatmul.mubr.f32.gmra.mxu1 %v1376_v24 }
 0x135   :  { %618 = vmatmul.mubr.f32.gmra.mxu0 %v1376_v24  ;;  %655 = vmatpush1.msra.mxu1 %v262_v23 }
 0x136   :  { %767 = vmatprep.subr.mxu0 %v1379_v27  ;;  %656 = vmatprep.subr.mxu1 %v255_v28 }
 0x137   :  { %768 = vmatpush1.msra.mxu0 %v1383_v30  ;;  %657 = vmatpush1.msra.mxu1 %v254_v31 }
 0x138   :  { %769 = vmatprep.subr.mxu0 %v1386_v32  ;;  %510 = vmatprep.mubr.f32.mxu1 %v1195_v13 }
 0x139   :  { %623 = vmatprep.mubr.f32.mxu0 %v1195_v13  ;;  %658 = vmatprep.subr.mxu1 %v247_v34 }
 0x13a   :  { %770 = vmatpush1.msra.mxu0 %v1390_v37  ;;  %511 = vmatmul.mubr.f32.gmra.mxu1 %v1394_v40 }
 0x13b   :  { %624 = vmatmul.mubr.f32.gmra.mxu0 %v1394_v40  ;;  %659 = vmatpush1.msra.mxu1 %v246_v38 }
 0x13c   :  { %771 = vmatprep.subr.mxu0 %v1397_v42  ;;  %660 = vmatprep.subr.mxu1 %v239_v44 }
 0x13d   :  { %772 = vmatpush1.msra.mxu0 %v1401_v46  ;;  %661 = vmatpush1.msra.mxu1 %v238_v48 }
 0x13e   :  { %773 = vmatprep.subr.mxu0 %v1404_v49  ;;  %694 = vmatprep.mubr.f32.mxu1 %v1195_v13 }
 0x13f   :  { %996 = vmatprep.subr.mxu1 %v1256_v14  ;;  %774 = vmatpush1.msra.mxu0 %v1407_v51  ;;  %v364_v14 = vlaneseq }
 0x140   :  { %807 = vmatprep.mubr.f32.mxu0 %v1195_v13  ;;  %695 = vmatmul.mubr.f32.vlgmr.msra.gmra.mxu1 %v1270_v26 }
 0x141   :  { %1012 = vmatpush1.msra.mxu1 %v1268_v25  ;;  %808 = vmatmul.mubr.f32.vlgmr.msra.gmra.mxu0 %v1270_v26  ;;  %v1476_v25 = vshrl.u32 %v364_v14, 7 }
 0x142   :  { %997 = vmatprep.subr.mxu1 %v1273_v29  ;;  %700 = vmatprep.mubr.f32.mxu1 %v1195_v13 }
 0x143   :  { %1013 = vmatpush1.msra.mxu1 %v1279_v33  ;;  %813 = vmatprep.mubr.f32.mxu0 %v1195_v13  ;;  %v366_v26 = vsub.s32 0, %v1476_v25  ;;  %v374_v29 = vsub.s32 2, %v1476_v25  ;;  %v1480_v33 = vld [vmem:[#allocation8] sm:$0xff] }
 0x144   :  { %998 = vmatprep.subr.mxu1 %v1285_v36  ;;  %701 = vmatmul.mubr.f32.gmra.mxu1 %v1282_v35  ;;  %v378_v36 = vsub.s32 3, %v1476_v25 }
 0x145   :  { %1014 = vmatpush1.msra.mxu1 %v1290_v39  ;;  %814 = vmatmul.mubr.f32.gmra.mxu0 %v1282_v35  ;;  %v370_v35 = vsub.s32 1, %v1476_v25  ;;  %v1488_v39 = vrot.slane %v1480_v33, %v374_v29 }
 0x146   :  { %999 = vmatprep.subr.mxu1 %v1293_v41  ;;  %706 = vmatprep.mubr.f32.mxu1 %v1195_v13 }
 0x147   :  { %1015 = vmatpush1.msra.mxu1 %v1297_v43  ;;  %819 = vmatprep.mubr.f32.mxu0 %v1195_v13  ;;  %v1491_v41 = vrot.slane %v1480_v33, %v370_v35  ;;  %v1494_v43 = vrot.slane %v1480_v33, %v378_v36  ;;  %v382_v35 = vsub.s32 4, %v1476_v25 }
 0x148   :  { %1000 = vmatprep.subr.mxu1 %v1304_v47  ;;  %707 = vmatmul.mubr.f32.gmra.mxu1 %v1301_v45 }
 0x149   :  { %1016 = vmatpush1.msra.mxu1 %v1309_v50  ;;  %820 = vmatmul.mubr.f32.gmra.mxu0 %v1301_v45 }
 0x14a   :  { %1001 = vmatprep.subr.mxu1 %v1312_v52  ;;  %712 = vmatprep.mubr.f32.mxu1 %v1195_v13 }
 0x14b   :  { %1017 = vmatpush1.msra.mxu1 %v1316_v55  ;;  %825 = vmatprep.mubr.f32.mxu0 %v1195_v13 }
 0x14c   :  { %1002 = vmatprep.subr.mxu1 %v1323_v58  ;;  %713 = vmatmul.mubr.f32.gmra.mxu1 %v1320_v57 }
 0x14d   :  { %1018 = vmatpush1.msra.mxu1 %v1328_v61  ;;  %826 = vmatmul.mubr.f32.gmra.mxu0 %v1320_v57 }
 0x14e   :  { %1003 = vmatprep.subr.mxu1 %v1331_v63  ;;  %718 = vmatprep.mubr.f32.mxu1 %v1195_v13 }
 0x14f   :  { %1019 = vmatpush1.msra.mxu1 %v1335_v1  ;;  %831 = vmatprep.mubr.f32.mxu0 %v1195_v13 }
 0x150   :  { %1004 = vmatprep.subr.mxu1 %v1342_v4  ;;  %719 = vmatmul.mubr.f32.gmra.mxu1 %v1339_v3 }
 0x151   :  { %1020 = vmatpush1.msra.mxu1 %v1347_v7  ;;  %832 = vmatmul.mubr.f32.gmra.mxu0 %v1339_v3 }
 0x152   :  { %1005 = vmatprep.subr.mxu1 %v1350_v9  ;;  %724 = vmatprep.mubr.f32.mxu1 %v1195_v13 }
 0x153   :  { %1021 = vmatpush1.msra.mxu1 %v1354_v11  ;;  %837 = vmatprep.mubr.f32.mxu0 %v1195_v13 }
 0x154   :  { %1006 = vmatprep.subr.mxu1 %v1361_v16  ;;  %725 = vmatmul.mubr.f32.gmra.mxu1 %v1358_v15 }
 0x155   :  { %1022 = vmatpush1.msra.mxu1 %v1365_v18  ;;  %838 = vmatmul.mubr.f32.gmra.mxu0 %v1358_v15 }
 0x156   :  { %1007 = vmatprep.subr.mxu1 %v1368_v20  ;;  %730 = vmatprep.mubr.f32.mxu1 %v1195_v13 }
 0x157   :  { %1023 = vmatpush1.msra.mxu1 %v1372_v22  ;;  %843 = vmatprep.mubr.f32.mxu0 %v1195_v13 }
 0x158   :  { %1008 = vmatprep.subr.mxu1 %v1379_v27  ;;  %731 = vmatmul.mubr.f32.gmra.mxu1 %v1376_v24 }
 0x159   :  { %1024 = vmatpush1.msra.mxu1 %v1383_v30  ;;  %844 = vmatmul.mubr.f32.gmra.mxu0 %v1376_v24 }
 0x15a   :  { %1009 = vmatprep.subr.mxu1 %v1386_v32  ;;  %736 = vmatprep.mubr.f32.mxu1 %v1195_v13 }
 0x15b   :  { %1025 = vmatpush1.msra.mxu1 %v1390_v37 }
 0x15c   :  { %1010 = vmatprep.subr.mxu1 %v1397_v42  ;;  %737 = vmatmul.mubr.f32.gmra.mxu1 %v1394_v40 }
 0x15d   :  { %1026 = vmatpush1.msra.mxu1 %v1401_v46  ;;  %849 = vmatprep.mubr.f32.mxu1 %v1195_v13  ;;  %v1485_v13 = vrot.slane %v1480_v33, %v366_v26 }
 0x15e   :  { %1011 = vmatprep.subr.mxu1 %v1404_v49 }
 0x15f   :  { %1027 = vmatpush1.msra.mxu1 %v1407_v51 }
 0x160   :  { %850 = vmatmul.mubr.f32.vlgmr.msra.gmra.mxu1 %v1394_v40 }
 0x1d1   :  { %v470_v45 = vpop.f32.mrf.mxu1  ;;  %v583_v47 = vpop.f32.mrf.mxu0 }
 0x1d2   :  { %v471_v50 = vadd.f32 %v470_v45, %v1485_v13  ;;  %v584_v52 = vadd.f32 %v583_v47, %v1488_v39  ;;  %v390_v45 = vsub.s32 6, %v1476_v25 }
 0x1d3   :  { %v472_v53 = vpop.f32.mrf.mxu1  ;;  %v585_v54 = vpop.f32.mrf.mxu0 }
 0x1d4   :  { %856 = vst [vmem:[#allocation10] sm:$0xff] %v471_v50  ;;  %858 = vst [vmem:[#allocation10 + $0x10] sm:$0xff] %v584_v52  ;;  %v473_v55 = vadd.f32 %v472_v53, %v1491_v41  ;;  %v586_v56 = vadd.f32 %v585_v54, %v1494_v43  ;;  %v386_v52 = vsub.s32 5, %v1476_v25 }
 0x1d6   :  { %857 = vst [vmem:[#allocation10 + $0x8] sm:$0xff] %v473_v55  ;;  %859 = vst [vmem:[#allocation10 + $0x18] sm:$0xff] %v586_v56  ;;  %v476_v57 = vpop.f32.mrf.mxu1  ;;  %v394_v55 = vsub.s32 7, %v1476_v25 }
 0x1d7   :  { %v477_v58 = vadd.f32 %v476_v57, %v1485_v13  ;;  %v589_v59 = vpop.f32.mrf.mxu0 }
 0x1d8   :  { %v590_v60 = vadd.f32 %v589_v59, %v1488_v39  ;;  %v478_v61 = vpop.f32.mrf.mxu1  ;;  %v1536_v59 = vrot.slane %v1480_v33, %v390_v45 }
 0x1d9   :  { %860 = vst [vmem:[#allocation10 + $0x20] sm:$0xff] %v477_v58  ;;  %v479_v62 = vadd.f32 %v478_v61, %v1491_v41  ;;  %v591_v63 = vpop.f32.mrf.mxu0  ;;  %v1532_v58 = vrot.slane %v1480_v33, %v382_v35 }
 0x1da   :  { %862 = vst [vmem:[#allocation10 + $0x30] sm:$0xff] %v590_v60  ;;  %v592_v0 = vadd.f32 %v591_v63, %v1494_v43  ;;  %v1542_v60 = vrot.slane %v1480_v33, %v394_v55 }
 0x1db   :  { %861 = vst [vmem:[#allocation10 + $0x28] sm:$0xff] %v479_v62 }
 0x1dc   :  { %863 = vst [vmem:[#allocation10 + $0x38] sm:$0xff] %v592_v0  ;;  %v482_v1 = vpop.f32.mrf.mxu1 }
 0x1dd   :  { %v483_v2 = vadd.f32 %v482_v1, %v1485_v13  ;;  %v595_v3 = vpop.f32.mrf.mxu0 }
 0x1de   :  { %v596_v4 = vadd.f32 %v595_v3, %v1488_v39  ;;  %v484_v5 = vpop.f32.mrf.mxu1 }
 0x1df   :  { %864 = vst [vmem:[#allocation10 + $0x40] sm:$0xff] %v483_v2  ;;  %v485_v6 = vadd.f32 %v484_v5, %v1491_v41  ;;  %v597_v7 = vpop.f32.mrf.mxu0 }
 0x1e0   :  { %866 = vst [vmem:[#allocation10 + $0x50] sm:$0xff] %v596_v4  ;;  %v598_v8 = vadd.f32 %v597_v7, %v1494_v43 }
 0x1e1   :  { %865 = vst [vmem:[#allocation10 + $0x48] sm:$0xff] %v485_v6 }
 0x1e2   :  { %867 = vst [vmem:[#allocation10 + $0x58] sm:$0xff] %v598_v8  ;;  %v488_v9 = vpop.f32.mrf.mxu1 }
 0x1e3   :  { %v489_v10 = vadd.f32 %v488_v9, %v1485_v13  ;;  %v601_v11 = vpop.f32.mrf.mxu0 }
 0x1e4   :  { %v602_v12 = vadd.f32 %v601_v11, %v1488_v39  ;;  %v490_v15 = vpop.f32.mrf.mxu1 }
 0x1e5   :  { %868 = vst [vmem:[#allocation10 + $0x60] sm:$0xff] %v489_v10  ;;  %v491_v16 = vadd.f32 %v490_v15, %v1491_v41  ;;  %v603_v17 = vpop.f32.mrf.mxu0 }
 0x1e6   :  { %870 = vst [vmem:[#allocation10 + $0x70] sm:$0xff] %v602_v12  ;;  %v604_v18 = vadd.f32 %v603_v17, %v1494_v43 }
 0x1e7   :  { %869 = vst [vmem:[#allocation10 + $0x68] sm:$0xff] %v491_v16 }
 0x1e8   :  { %871 = vst [vmem:[#allocation10 + $0x78] sm:$0xff] %v604_v18  ;;  %v494_v19 = vpop.f32.mrf.mxu1 }
 0x1e9   :  { %v495_v20 = vadd.f32 %v494_v19, %v1485_v13  ;;  %v607_v21 = vpop.f32.mrf.mxu0 }
 0x1ea   :  { %v608_v22 = vadd.f32 %v607_v21, %v1488_v39  ;;  %v496_v23 = vpop.f32.mrf.mxu1 }
 0x1eb   :  { %872 = vst [vmem:[#allocation10 + $0x80] sm:$0xff] %v495_v20  ;;  %v497_v24 = vadd.f32 %v496_v23, %v1491_v41  ;;  %v609_v27 = vpop.f32.mrf.mxu0 }
 0x1ec   :  { %874 = vst [vmem:[#allocation10 + $0x90] sm:$0xff] %v608_v22  ;;  %v610_v28 = vadd.f32 %v609_v27, %v1494_v43 }
 0x1ed   :  { %873 = vst [vmem:[#allocation10 + $0x88] sm:$0xff] %v497_v24 }
 0x1ee   :  { %875 = vst [vmem:[#allocation10 + $0x98] sm:$0xff] %v610_v28  ;;  %v500_v30 = vpop.f32.mrf.mxu1 }
 0x1ef   :  { %v501_v31 = vadd.f32 %v500_v30, %v1485_v13  ;;  %v613_v32 = vpop.f32.mrf.mxu0 }
 0x1f0   :  { %v614_v34 = vadd.f32 %v613_v32, %v1488_v39  ;;  %v502_v37 = vpop.f32.mrf.mxu1 }
 0x1f1   :  { %876 = vst [vmem:[#allocation10 + $0xa0] sm:$0xff] %v501_v31  ;;  %v503_v38 = vadd.f32 %v502_v37, %v1491_v41  ;;  %v615_v40 = vpop.f32.mrf.mxu0 }
 0x1f2   :  { %878 = vst [vmem:[#allocation10 + $0xb0] sm:$0xff] %v614_v34  ;;  %v616_v42 = vadd.f32 %v615_v40, %v1494_v43 }
 0x1f3   :  { %877 = vst [vmem:[#allocation10 + $0xa8] sm:$0xff] %v503_v38 }
 0x1f4   :  { %879 = vst [vmem:[#allocation10 + $0xb8] sm:$0xff] %v616_v42  ;;  %v506_v44 = vpop.f32.mrf.mxu1 }
 0x1f5   :  { %v507_v46 = vadd.f32 %v506_v44, %v1485_v13  ;;  %v619_v48 = vpop.f32.mrf.mxu0 }
 0x1f6   :  { %v620_v49 = vadd.f32 %v619_v48, %v1488_v39  ;;  %v508_v51 = vpop.f32.mrf.mxu1 }
 0x1f7   :  { %880 = vst [vmem:[#allocation10 + $0xc0] sm:$0xff] %v507_v46  ;;  %v509_v14 = vadd.f32 %v508_v51, %v1491_v41  ;;  %v621_v26 = vpop.f32.mrf.mxu0 }
 0x1f8   :  { %882 = vst [vmem:[#allocation10 + $0xd0] sm:$0xff] %v620_v49  ;;  %v622_v29 = vadd.f32 %v621_v26, %v1494_v43 }
 0x1f9   :  { %881 = vst [vmem:[#allocation10 + $0xc8] sm:$0xff] %v509_v14 }
 0x1fa   :  { %883 = vst [vmem:[#allocation10 + $0xd8] sm:$0xff] %v622_v29  ;;  %v512_v36 = vpop.f32.mrf.mxu1 }
 0x1fb   :  { %v513_v47 = vadd.f32 %v512_v36, %v1485_v13  ;;  %v625_v50 = vpop.f32.mrf.mxu0 }
 0x1fc   :  { %v626_v53 = vadd.f32 %v625_v50, %v1488_v39  ;;  %v514_v54 = vpop.f32.mrf.mxu1  ;;  %v1539_v39 = vrot.slane %v1480_v33, %v386_v52 }
 0x1fd   :  { %884 = vst [vmem:[#allocation10 + $0xe0] sm:$0xff] %v513_v47  ;;  %v515_v56 = vadd.f32 %v514_v54, %v1491_v41  ;;  %v627_v57 = vpop.f32.mrf.mxu0 }
 0x1fe   :  { %886 = vst [vmem:[#allocation10 + $0xf0] sm:$0xff] %v626_v53  ;;  %v628_v13 = vadd.f32 %v627_v57, %v1494_v43 }
 0x1ff   :  { %885 = vst [vmem:[#allocation10 + $0xe8] sm:$0xff] %v515_v56 }
 0x200   :  { %887 = vst [vmem:[#allocation10 + $0xf8] sm:$0xff] %v628_v13  ;;  %v696_v25 = vpop.f32.mrf.mxu1 }
 0x201   :  { %v697_v41 = vadd.f32 %v696_v25, %v1532_v58  ;;  %v809_v61 = vpop.f32.mrf.mxu0 }
 0x202   :  { %1148 = shalt.err (!%p1145_p10)
}
 0x203   :  { %s1197_s21 = smov 512   ;;  %s1198_s22 = smov 32   ;;  %v810_v33 = vadd.f32 %v809_v61, %v1536_v59  ;;  %v698_v43 = vpop.f32.mrf.mxu1  ;;  %888 = vst [vmem:[#allocation11] sm:$0xff] %v697_v41  ;;  %v811_v63 = vpop.f32.mrf.mxu0 }
 0x204   :  { %931 = dma.vmem_to_hbm [thread:$0]  %s926_s19, 4096, %s1593_s5, [#allocation4], %s1197_s21, %s1197_s21, %s1198_s22   ;;  %v699_v62 = vadd.f32 %v698_v43, %v1539_v39  ;;  %v812_v0 = vadd.f32 %v811_v63, %v1542_v60 }
 0x205   :  { %890 = vst [vmem:[#allocation11 + $0x10] sm:$0xff] %v810_v33  ;;  %v702_v1 = vpop.f32.mrf.mxu1  ;;  %v815_v3 = vpop.f32.mrf.mxu0  ;;  %s1199_s5 = smov [#allocation11]  }
 0x206   :  { %889 = vst [vmem:[#allocation11 + $0x8] sm:$0xff] %v699_v62  ;;  %v703_v2 = vadd.f32 %v702_v1, %v1532_v58  ;;  %891 = vst [vmem:[#allocation11 + $0x18] sm:$0xff] %v812_v0  ;;  %v816_v4 = vadd.f32 %v815_v3, %v1536_v59  ;;  %s937_s25 = sshll.u32 %s1199_s5, 4  ;;  %s938_s25 = int_to_ptr.vmem [resolvable:$true] %s937_s25 }
 0x207   :  { %v704_v5 = vpop.f32.mrf.mxu1  ;;  %v817_v7 = vpop.f32.mrf.mxu0  ;;  %s1157_s26 = scalar_lea.vmem %s938_s25, 4096  ;;  %p1162_p12 = scmp.lt.s32.totalorder %s938_s25, %s938_s25 }
 0x208   :  { %892 = vst [vmem:[#allocation11 + $0x20] sm:$0xff] %v703_v2  ;;  %v705_v6 = vadd.f32 %v704_v5, %v1539_v39  ;;  %894 = vst [vmem:[#allocation11 + $0x30] sm:$0xff] %v816_v4  ;;  %v818_v8 = vadd.f32 %v817_v7, %v1542_v60  ;;  %p1158_p11 = scmp.ne.s32.totalorder %s938_s25, %s1157_s26  ;;  %p1163_p13 = scmp.lt.s32.totalorder %s1157_s26, %s1157_s26 }
 0x209   :  { %v708_v9 = vpop.f32.mrf.mxu1  ;;  %v821_v11 = vpop.f32.mrf.mxu0 }
 0x20a   :  { %893 = vst [vmem:[#allocation11 + $0x28] sm:$0xff] %v705_v6  ;;  %v709_v10 = vadd.f32 %v708_v9, %v1532_v58  ;;  %895 = vst [vmem:[#allocation11 + $0x38] sm:$0xff] %v818_v8  ;;  %v822_v12 = vadd.f32 %v821_v11, %v1536_v59  ;;  %p1164_p0 = por %p1163_p13, %p1162_p12 }
 0x20b   :  { %v710_v15 = vpop.f32.mrf.mxu1  ;;  %v823_v17 = vpop.f32.mrf.mxu0 }
 0x20c   :  { %896 = vst [vmem:[#allocation11 + $0x40] sm:$0xff] %v709_v10  ;;  %v711_v16 = vadd.f32 %v710_v15, %v1539_v39  ;;  %898 = vst [vmem:[#allocation11 + $0x50] sm:$0xff] %v822_v12  ;;  %v824_v18 = vadd.f32 %v823_v17, %v1542_v60  ;;  %p1165_p1 = pnand %p1164_p0, %p1158_p11 }
 0x20d   :  { %v714_v19 = vpop.f32.mrf.mxu1  ;;  %v827_v21 = vpop.f32.mrf.mxu0 }
 0x20e   :  { %897 = vst [vmem:[#allocation11 + $0x48] sm:$0xff] %v711_v16  ;;  %v715_v20 = vadd.f32 %v714_v19, %v1532_v58  ;;  %899 = vst [vmem:[#allocation11 + $0x58] sm:$0xff] %v824_v18  ;;  %v828_v22 = vadd.f32 %v827_v21, %v1536_v59 }
 0x20f   :  { %v716_v23 = vpop.f32.mrf.mxu1  ;;  %v829_v27 = vpop.f32.mrf.mxu0 }
 0x210   :  { %900 = vst [vmem:[#allocation11 + $0x60] sm:$0xff] %v715_v20  ;;  %v717_v24 = vadd.f32 %v716_v23, %v1539_v39  ;;  %902 = vst [vmem:[#allocation11 + $0x70] sm:$0xff] %v828_v22  ;;  %v830_v28 = vadd.f32 %v829_v27, %v1542_v60 }
 0x211   :  { %v720_v30 = vpop.f32.mrf.mxu1  ;;  %v833_v32 = vpop.f32.mrf.mxu0 }
 0x212   :  { %901 = vst [vmem:[#allocation11 + $0x68] sm:$0xff] %v717_v24  ;;  %v721_v31 = vadd.f32 %v720_v30, %v1532_v58  ;;  %903 = vst [vmem:[#allocation11 + $0x78] sm:$0xff] %v830_v28  ;;  %v834_v34 = vadd.f32 %v833_v32, %v1536_v59 }
 0x213   :  { %v722_v37 = vpop.f32.mrf.mxu1  ;;  %v835_v40 = vpop.f32.mrf.mxu0 }
 0x214   :  { %904 = vst [vmem:[#allocation11 + $0x80] sm:$0xff] %v721_v31  ;;  %v723_v38 = vadd.f32 %v722_v37, %v1539_v39  ;;  %906 = vst [vmem:[#allocation11 + $0x90] sm:$0xff] %v834_v34  ;;  %v836_v42 = vadd.f32 %v835_v40, %v1542_v60 }
 0x215   :  { %v726_v44 = vpop.f32.mrf.mxu1  ;;  %v839_v48 = vpop.f32.mrf.mxu0 }
 0x216   :  { %905 = vst [vmem:[#allocation11 + $0x88] sm:$0xff] %v723_v38  ;;  %v727_v46 = vadd.f32 %v726_v44, %v1532_v58  ;;  %907 = vst [vmem:[#allocation11 + $0x98] sm:$0xff] %v836_v42  ;;  %v840_v49 = vadd.f32 %v839_v48, %v1536_v59 }
 0x217   :  { %v728_v51 = vpop.f32.mrf.mxu1  ;;  %v841_v26 = vpop.f32.mrf.mxu0 }
 0x218   :  { %908 = vst [vmem:[#allocation11 + $0xa0] sm:$0xff] %v727_v46  ;;  %v729_v14 = vadd.f32 %v728_v51, %v1539_v39  ;;  %910 = vst [vmem:[#allocation11 + $0xb0] sm:$0xff] %v840_v49  ;;  %v842_v29 = vadd.f32 %v841_v26, %v1542_v60 }
 0x219   :  { %v732_v35 = vpop.f32.mrf.mxu1  ;;  %v845_v45 = vpop.f32.mrf.mxu0 }
 0x21a   :  { %909 = vst [vmem:[#allocation11 + $0xa8] sm:$0xff] %v729_v14  ;;  %v733_v36 = vadd.f32 %v732_v35, %v1532_v58  ;;  %911 = vst [vmem:[#allocation11 + $0xb8] sm:$0xff] %v842_v29  ;;  %v846_v47 = vadd.f32 %v845_v45, %v1536_v59 }
 0x21b   :  { %v734_v50 = vpop.f32.mrf.mxu1  ;;  %v847_v53 = vpop.f32.mrf.mxu0 }
 0x21c   :  { %912 = vst [vmem:[#allocation11 + $0xc0] sm:$0xff] %v733_v36  ;;  %v735_v52 = vadd.f32 %v734_v50, %v1539_v39  ;;  %914 = vst [vmem:[#allocation11 + $0xd0] sm:$0xff] %v846_v47  ;;  %v848_v54 = vadd.f32 %v847_v53, %v1542_v60 }
 0x21d   :  { %v738_v55 = vpop.f32.mrf.mxu1 }
 0x21e   :  { %913 = vst [vmem:[#allocation11 + $0xc8] sm:$0xff] %v735_v52  ;;  %v739_v56 = vadd.f32 %v738_v55, %v1532_v58  ;;  %915 = vst [vmem:[#allocation11 + $0xd8] sm:$0xff] %v848_v54 }
 0x21f   :  { %v740_v57 = vpop.f32.mrf.mxu1 }
 0x220   :  { %916 = vst [vmem:[#allocation11 + $0xe0] sm:$0xff] %v739_v56  ;;  %v741_v13 = vadd.f32 %v740_v57, %v1539_v39 }
 0x221   :  { %v851_v25 = vpop.f32.mrf.mxu1 }
 0x222   :  { %917 = vst [vmem:[#allocation11 + $0xe8] sm:$0xff] %v741_v13  ;;  %v852_v41 = vadd.f32 %v851_v25, %v1536_v59 }
 0x223   :  { %v853_v61 = vpop.f32.mrf.mxu1 }
 0x224   :  { %918 = vst [vmem:[#allocation11 + $0xf0] sm:$0xff] %v852_v41  ;;  %v854_v33 = vadd.f32 %v853_v61, %v1542_v60 }
 0x226   :  { %919 = vst [vmem:[#allocation11 + $0xf8] sm:$0xff] %v854_v33 }
 0x227   :  { %1168 = shalt.err (!%p1165_p1)
}
 0x228   :  { %943 = dma.vmem_to_hbm [thread:$0]  %s938_s25, 4096, %s1594_s6, [#allocation12], %s1197_s21, %s1197_s21, %s1198_s22  }
 0x229   :  { %1183 = dma.done.wait [#allocation4], 4096  }
 0x22a   :  { %1184 = vsyncadd [#allocation4], 4294963200 }
 0x22b   :  { %1185 = dma.done.wait [#allocation12], 4096  }
 0x22c   :  { %1186 = vsyncadd [#allocation12], 4294963200 }
 0x22d   :  { %950 = vsyncpa [#allocation3], 1 }
 0x22e   :  { %951 = vsyncpa [#allocation6], 1 }
 0x22f   :  { %952 = vsyncpa [#allocation9], 1 }
 0x230   :  { %953 = vsyncpa [#allocation4], 1 }
 0x231   :  { %954 = vsyncpa [#allocation12], 1 }

</bundles_post_ra>
